<compile_context>
chip_gen: v5e
topology: v5e:2x2
jax: 0.10.0
libtpu: 0.0.40
codegen_flags: <defaults>
</compile_context>

<pallas_src>
import functools

import jax
import jax.numpy as jnp
from jax.experimental import pallas as pl
from jax.experimental.pallas import tpu as pltpu


# Below this many x elements, the fused XLA sigmoid(x@w.T+b) (also mem-bound and
# near roofline) beats custom-call dispatch + per-step overhead.
_PALLAS_MIN_ELEMS = 1 << 18

# Per-tile byte target for the streamed x block (padded bytes).  2-8 MiB is the
# measured sweet spot for HBM-streaming kernels; 4 MiB keeps 2 buffers well under
# the VMEM limit on every generation.
_TILE_TARGET_BYTES = 4 * 1024 * 1024
# Hard cap for the double-buffered x stream (2 * tile).
_X_STREAM_BUDGET_BYTES = 24 * 1024 * 1024
# Never ask Mosaic for more than this (v7x has only 64 MiB physical VMEM; leave
# headroom for internal scratch).  v5e/v6e (128 MiB) are trivially fine.
_VMEM_LIMIT_CAP_BYTES = 48 * 1024 * 1024


def _round_up(x: int, m: int) -> int:
    return ((x + m - 1) // m) * m


def _meta_learner_kernel(x_ref, w_ref, b_ref, o_ref):
    # x_ref: (TB, D)  w_ref: (O, D)  b_ref: (O, 1) f32  o_ref: (O, TB)
    # Contract the feature dim of both operands -> (O, TB): batch on the lane axis.
    z = jax.lax.dot_general(
        w_ref[...],
        x_ref[...],
        dimension_numbers=(((1,), (1,)), ((), ())),
        preferred_element_type=jnp.float32,
    )
    z = z + b_ref[...]  # (O, 1) broadcast over lanes
    # sigmoid(z) == 0.5 * (tanh(z/2) + 1): single EUP op, no VALU divide.
    o_ref[...] = (0.5 * (jnp.tanh(0.5 * z) + 1.0)).astype(o_ref.dtype)


def _pick_batch_tile(batch: int, input_dim: int, itemsize: int) -> int:
    """Byte-targeted, lane-pad-aware batch tile (multiple of 128 or full extent)."""
    # A (TB, D) VMEM block with D < 128 is padded to round_up(D, 128) lanes.
    padded_row_bytes = _round_up(input_dim, 128) * itemsize
    tb = max(128, _TILE_TARGET_BYTES // padded_row_bytes)
    tb = min(tb, max(128, _X_STREAM_BUDGET_BYTES // (2 * padded_row_bytes)))
    tb = (tb // 128) * 128
    # >= 2 grid steps along the "parallel" batch axis so both v7x TensorCores get
    # work (harmless no-op on single-TC v5e/v6e).
    tb = min(tb, _round_up(pl.cdiv(batch, 2), 128))
    if tb >= batch:
        return batch  # full-extent block: always satisfies the (8,128) rule
    return tb


def _vmem_limit_bytes(tb: int, input_dim: int, output_dim: int,
                      x_itemsize: int, out_itemsize: int) -> int:
    """Padded-byte VMEM estimate: double-buffered x/out streams + resident w/b."""
    pad_d = _round_up(input_dim, 128)
    pad_tb = _round_up(tb, 128)
    pad_o = _round_up(output_dim, 8)
    need = (2 * _round_up(tb, 8) * pad_d * x_itemsize    # x stream (2 buffers)
            + 2 * pad_o * pad_tb * out_itemsize          # output stream (2 buffers)
            + pad_o * pad_d * x_itemsize                 # resident weight
            + pad_o * 128 * 4                            # resident bias
            + (4 << 20))                                 # compiler internal scratch
    return int(min(_VMEM_LIMIT_CAP_BYTES, max(need, 16 << 20)))


def _fix_feature_dim(weight: jax.Array, x_dim: int) -> jax.Array:
    """Reproduce the module's feature-dim fixup without touching the big x tensor.

    PyTorch: if x has more features, x is sliced (== zero-pad the weight columns);
    if x has fewer, x is zero-padded (== drop the extra weight columns).
    Either way only the tiny (O, D) weight is adjusted.
    """
    out_dim, w_dim = weight.shape
    if x_dim == w_dim:
        return weight
    if x_dim < w_dim:
        return weight[:, :x_dim]
    pad = jnp.zeros((out_dim, x_dim - w_dim), dtype=weight.dtype)
    return jnp.concatenate([weight, pad], axis=1)


def _fold_lanes(x: jax.Array, weight: jax.Array):
    """Fold k = 128 // D batch rows into the lane axis for small feature dims.

    Only used when output_dim == 1, 128 % D == 0 and batch % k == 0.  The reshape
    of x is free (row-major contiguous); the weight becomes a tiny (k, 128)
    block-diagonal matrix.  Kernel output is (k, batch/k); row i / col j of its
    transpose corresponds to original batch row i*k + j, so a reshape recovers
    the original order.
    """
    batch, d = x.shape
    if weight.shape[0] != 1 or d >= 128 or 128 % d != 0:
        return None
    k = 128 // d
    if k <= 1 or batch % k != 0:
        return None
    x_f = x.reshape(batch // k, 128)
    w_bd = jnp.kron(jnp.eye(k, dtype=weight.dtype), weight)  # (k, 128)
    return x_f, w_bd, k


def _meta_learner_pallas(x, weight, bias):
    """sigmoid(weight @ x.T + bias) -> (O, batch) lane-dense slab."""
    batch, input_dim = x.shape
    output_dim = weight.shape[0]
    out_dtype = x.dtype
    itemsize = jnp.dtype(x.dtype).itemsize
    out_itemsize = jnp.dtype(out_dtype).itemsize

    tb = _pick_batch_tile(batch, input_dim, itemsize)
    grid = (pl.cdiv(batch, tb),)

    cost = pl.CostEstimate(
        flops=2 * batch * input_dim * output_dim,
        transcendentals=batch * output_dim,
        bytes_accessed=(batch * input_dim * itemsize
                        + batch * output_dim * out_itemsize
                        + output_dim * input_dim * itemsize
                        + output_dim * 4),
    )

    # NOTE (ragged last tile): when batch % tb != 0, the padded rows of the final
    # x block flow through the matmul/tanh but only land in output columns beyond
    # `batch`, which blocked-BlockSpec writeback masks out.  This relies on
    # blocked-block OOB semantics; revisit if out_specs ever move to pl.Element.
    out_t = pl.pallas_call(
        _meta_learner_kernel,
        out_shape=jax.ShapeDtypeStruct((output_dim, batch), out_dtype),
        grid=grid,
        in_specs=[
            pl.BlockSpec((tb, input_dim), lambda i: (i, 0)),          # x: streamed
            pl.BlockSpec((output_dim, input_dim), lambda i: (0, 0)),  # weight: resident
            pl.BlockSpec((output_dim, 1), lambda i: (0, 0)),          # bias: resident
        ],
        # Lane-dense output slab: (O, TB), batch on the 128-lane axis.
        out_specs=pl.BlockSpec((output_dim, tb), lambda i: (0, i)),
        compiler_params=pltpu.CompilerParams(
            dimension_semantics=("parallel",),
            vmem_limit_bytes=_vmem_limit_bytes(tb, input_dim, output_dim,
                                               itemsize, out_itemsize),
        ),
        cost_estimate=cost,
    )(x,
      weight.astype(x.dtype),                                   # tiny cast only
      bias.reshape(output_dim, 1).astype(jnp.float32))
    return out_t


@functools.partial(jax.jit, static_argnames=("force_pallas",))
def meta_learner_forward(x, weight, bias, *, force_pallas: bool = False):
    """sigmoid(x @ weight.T + bias) with the module's feature-dim fixup.

    x:      [batch, x_features]      f32 or bf16 (streamed in its native dtype)
    weight: [output_dim, input_dim]  f32 (PyTorch nn.Linear layout)
    bias:   [output_dim]             f32
    returns [batch, output_dim]      x.dtype
    """
    x = jnp.asarray(x)
    if x.dtype != jnp.bfloat16:
        x = x.astype(jnp.float32)     # keep caller-supplied bf16; everything else f32
    weight = jnp.asarray(weight, jnp.float32)
    bias = jnp.asarray(bias, jnp.float32)

    batch, x_dim = x.shape
    w = _fix_feature_dim(weight, x_dim)

    if not force_pallas and batch * x_dim < _PALLAS_MIN_ELEMS:
        # Small problem: plain fused XLA beats kernel dispatch + per-step overhead.
        y = jax.nn.sigmoid(x.astype(jnp.float32) @ w.T + bias)
        return y.astype(x.dtype)

    folded = _fold_lanes(x, w)
    if folded is not None:
        x_f, w_bd, k = folded
        b_f = jnp.broadcast_to(bias.reshape(1, 1), (k, 1))
        out_t = _meta_learner_pallas(x_f, w_bd, b_f)        # (k, batch // k)
        return out_t.T.reshape(batch, 1)                    # cheap small transpose

    out_t = _meta_learner_pallas(x, w, bias)                # (O, batch)
    return out_t.T                                          # (batch, O)


def make_meta_learner_params(input_dim: int, output_dim: int = 1):
    """Deterministic init matching the PyTorch __init__:
    weight = 1/input_dim everywhere, bias = 0."""
    weight = jnp.full((output_dim, input_dim), 1.0 / input_dim, dtype=jnp.float32)
    bias = jnp.zeros((output_dim,), dtype=jnp.float32)
    return weight, bias


if __name__ == "__main__":
    key = jax.random.PRNGKey(0)
    k1, k2, k3 = jax.random.split(key, 3)

    # --- Case 1: D=32 -> lane-folding path (k=4), forced through Pallas. ---
    batch, input_dim, output_dim = 256, 32, 1
    x = jax.random.normal(k1, (batch, input_dim), dtype=jnp.float32)
    weight, bias = make_meta_learner_params(input_dim, output_dim)
    out = jax.block_until_ready(
        meta_learner_forward(x, weight, bias, force_pallas=True))
    ref = jax.nn.sigmoid(x @ weight.T + bias)
    assert out.shape == (batch, output_dim)
    assert jnp.allclose(out, ref, atol=1e-5, rtol=1e-5), "case1"

    # --- Case 2: D=96 (no folding), multi-step grid with a ragged last tile. ---
    batch2, input_dim2 = 2300, 96
    x2 = jax.random.normal(k2, (batch2, input_dim2), dtype=jnp.float32)
    w2 = 0.1 * jax.random.normal(k3, (output_dim, input_dim2), dtype=jnp.float32)
    b2 = jnp.array([0.25], dtype=jnp.float32)
    out2 = jax.block_until_ready(
        meta_learner_forward(x2, w2, b2, force_pallas=True))
    ref2 = jax.nn.sigmoid(x2 @ w2.T + b2)
    assert out2.shape == (batch2, output_dim)
    assert jnp.allclose(out2, ref2, atol=1e-5, rtol=1e-5), "case2"

    # --- Case 3: feature-dim mismatch (x wider than model) handled on weight. ---
    x3 = jax.random.normal(k1, (128, 40), dtype=jnp.float32)
    out3 = jax.block_until_ready(
        meta_learner_forward(x3, weight, bias, force_pallas=True))
    ref3 = jax.nn.sigmoid(x3[:, :input_dim] @ weight.T + bias)
    assert jnp.allclose(out3, ref3, atol=1e-5, rtol=1e-5), "case3"

    # --- Case 4: tiny shapes dispatch to the plain XLA path. ---
    x4 = jax.random.normal(k2, (8, 8), dtype=jnp.float32)
    w4, b4 = make_meta_learner_params(8, 1)
    out4 = jax.block_until_ready(meta_learner_forward(x4, w4, b4))
    assert jnp.allclose(out4, jax.nn.sigmoid(x4 @ w4.T + b4), atol=1e-6), "case4"

    # --- Case 5: caller-supplied bf16 x is streamed in its native dtype. ---
    x5 = x2.astype(jnp.bfloat16)
    out5 = jax.block_until_ready(
        meta_learner_forward(x5, w2, b2, force_pallas=True))
    assert out5.dtype == jnp.bfloat16
    assert jnp.allclose(out5.astype(jnp.float32), ref2, atol=2e-2, rtol=2e-2), "case5"

    # --- Case 6: folding skipped when batch % k != 0 (D=32, k=4, batch=130). ---
    x6 = jax.random.normal(k3, (130, 32), dtype=jnp.float32)
    out6 = jax.block_until_ready(
        meta_learner_forward(x6, weight, bias, force_pallas=True))
    ref6 = jax.nn.sigmoid(x6 @ weight.T + bias)
    assert jnp.allclose(out6, ref6, atol=1e-5, rtol=1e-5), "case6"

    print("KERNEL_OK")
</pallas_src>

<mosaic_0001>
module attributes {stable_mosaic.version = 11 : i64} {
  func.func @_meta_learner_kernel(%arg0: i32, %arg1: memref<64x128xf32, #tpu.memory_space<vmem>>, %arg2: memref<4x128xf32, #tpu.memory_space<vmem>>, %arg3: memref<4x1xf32, #tpu.memory_space<vmem>>, %arg4: memref<4x64xf32, #tpu.memory_space<vmem>>) attributes {dimension_semantics = [#tpu.dimension_semantics<parallel>], iteration_bounds = array<i64: 1>, scalar_prefetch = 0 : i64, scratch_operands = 0 : i64, tpu.core_type = #tpu.core_type<tc>, window_params = [{transform_indices = @transform_0, window_bounds = array<i64: 64, 128>}, {pipeline_mode = #tpu.pipeline_mode<synchronous>, transform_indices = @transform_1, window_bounds = array<i64: 4, 128>}, {pipeline_mode = #tpu.pipeline_mode<synchronous>, transform_indices = @transform_2, window_bounds = array<i64: 4, 1>}, {transform_indices = @transform_3, window_bounds = array<i64: 4, 64>}]} {
    %c0 = arith.constant 0 : index
    %c0_0 = arith.constant 0 : index
    %0 = vector.load %arg2[%c0, %c0_0] : memref<4x128xf32, #tpu.memory_space<vmem>>, vector<4x128xf32>
    %c0_1 = arith.constant 0 : index
    %c0_2 = arith.constant 0 : index
    %1 = vector.load %arg1[%c0_1, %c0_2] : memref<64x128xf32, #tpu.memory_space<vmem>>, vector<64x128xf32>
    %cst = arith.constant dense<0.000000e+00> : vector<4x64xf32>
    %2 = tpu.matmul %0, %1, %cst {dimension_numbers = #tpu.dot_dimension_numbers<[1], [1], [0], [0], [0, 0, 1, 0], [], []>} : vector<4x128xf32>, vector<64x128xf32>, vector<4x64xf32> -> vector<4x64xf32>
    %c0_3 = arith.constant 0 : index
    %c0_4 = arith.constant 0 : index
    %3 = vector.load %arg3[%c0_3, %c0_4] : memref<4x1xf32, #tpu.memory_space<vmem>>, vector<4x1xf32>
    %4 = vector.broadcast %3 : vector<4x1xf32> to vector<4x64xf32>
    %5 = arith.addf %2, %4 : vector<4x64xf32>
    %cst_5 = arith.constant 5.000000e-01 : f32
    %6 = vector.broadcast %cst_5 : f32 to vector<4x64xf32>
    %7 = arith.mulf %6, %5 : vector<4x64xf32>
    %8 = math.tanh %7 : vector<4x64xf32>
    %cst_6 = arith.constant 1.000000e+00 : f32
    %9 = vector.broadcast %cst_6 : f32 to vector<4x64xf32>
    %10 = arith.addf %8, %9 : vector<4x64xf32>
    %cst_7 = arith.constant 5.000000e-01 : f32
    %11 = vector.broadcast %cst_7 : f32 to vector<4x64xf32>
    %12 = arith.mulf %11, %10 : vector<4x64xf32>
    %c0_8 = arith.constant 0 : index
    %c0_9 = arith.constant 0 : index
    %13 = vector.load %arg4[%c0_8, %c0_9] : memref<4x64xf32, #tpu.memory_space<vmem>>, vector<4x64xf32>
    tpu.vector_store %arg4[%c0_8, %c0_9], %12 {strides = array<i32>} : memref<4x64xf32, #tpu.memory_space<vmem>>, vector<4x64xf32>,
    return
  }
  func.func @transform_0(%arg0: i32) -> (i32, i32) {
    %c0_i32 = arith.constant 0 : i32
    %c0_i32_0 = arith.constant 0 : i32
    return %arg0, %c0_i32 : i32, i32
  }
  func.func @transform_1(%arg0: i32) -> (i32, i32) {
    %c0_i32 = arith.constant 0 : i32
    %c0_i32_0 = arith.constant 0 : i32
    %c0_i32_1 = arith.constant 0 : i32
    return %c0_i32, %c0_i32_0 : i32, i32
  }
  func.func @transform_2(%arg0: i32) -> (i32, i32) {
    %c0_i32 = arith.constant 0 : i32
    %c0_i32_0 = arith.constant 0 : i32
    %c0_i32_1 = arith.constant 0 : i32
    return %c0_i32, %c0_i32_0 : i32, i32
  }
  func.func @transform_3(%arg0: i32) -> (i32, i32) {
    %c0_i32 = arith.constant 0 : i32
    %c0_i32_0 = arith.constant 0 : i32
    return %c0_i32, %arg0 : i32, i32
  }
}

</mosaic_0001>

<bundles_post_ra>
// kernel: meta_learner_forward.1
= control target key start
LH: loop header
LB: loop body
LE: loop exit
PB: predicated region body
PF: predicated region fallthrough
CT: control target
= control target key end

     0   :  { %v63_v1 = vmov 0   ;;  %vm53_vm0 = vcmask 519168   ;;  %s117_s0 = inlined_call_operand.vmem [shape: f32[64,128], index: 0, kind: input, shape index: {}]   ;;  %s118_s2 = inlined_call_operand.vmem [shape: f32[4,1], index: 2, kind: input, shape index: {}]   ;;  %s119_s1 = inlined_call_operand.vmem [shape: f32[4,128], index: 1, kind: input, shape index: {}]   ;;  %s120_s3 = inlined_call_operand.vmem [shape: f32[4,64], index: 3, kind: output, shape index: {}]  }
   0x1   :  { %v22_v0 = vld [vmem:[%s117_s0 + $0x38] sm:$0xff]  ;;  %60 = vset.pattern.permute.xlu0 %v63_v1  ;;  %v21_v2 = vld [vmem:[%s117_s0 + $0x30] sm:$0xff]  ;;  %v23_v3 = vld [vmem:[%s118_s2] sm:$0xf] }
   0x2   :  { %37 = vmatpush.xpose.msra.mxu0 %v22_v0  ;;  %26 = vperm.xlu0 %60, %v23_v3   ;;  %v20_v4 = vld [vmem:[%s117_s0 + $0x28] sm:$0xff]  ;;  %v19_v5 = vld [vmem:[%s117_s0 + $0x20] sm:$0xff]  ;;  %v18_v6 = vld [vmem:[%s117_s0 + $0x18] sm:$0xff] }
   0x3   :  { %v17_v7 = vld [vmem:[%s117_s0 + $0x10] sm:$0xff]  ;;  %v16_v8 = vld [vmem:[%s117_s0 + $0x8] sm:$0xff]  ;;  %v15_v9 = vld [vmem:[%s117_s0] sm:$0xff] }
   0x4   :  { %v14_v10 = vld [vmem:[%s119_s1] sm:$0xf] }
   0x6   :  { %38 = vmatpush.xpose.msra.mxu0 %v21_v2 }
   0xa   :  { %39 = vmatpush.xpose.msra.mxu0 %v20_v4 }
   0xe   :  { %40 = vmatpush.xpose.msra.mxu0 %v19_v5 }
  0x12   :  { %41 = vmatpush.xpose.msra.mxu0 %v18_v6 }
  0x16   :  { %42 = vmatpush.xpose.msra.mxu0 %v17_v7 }
  0x1a   :  { %43 = vmatpush.xpose.msra.mxu0 %v16_v8 }
  0x1e   :  { %44 = vmatpush.xpose.msra.mxu0 %v15_v9 }
  0x21   :  { %45 = vmatmul.f32.vlgmr.msra.gmra.mxu0 %v14_v10 }
  0x74   :  { %v27_v11 = vpop.permute.xlu0 %26 }
  0x9e   :  { %v46_v12 = vpop.f32.mrf.mxu0 }
  0x9f   :  { %v47_v13 = vadd.f32 %v46_v12, %v27_v11 }
  0xa1   :  { %v49_v14 = vmul.f32 0.5, %v47_v13 }
  0xa3   :  { %61 = vtanh.f32 %v49_v14 }
  0xa9   :  { %v62_v15 = vpop.eup %61 }
  0xaa   :  { %v51_v16 = vadd.f32 1.0, %v62_v15 }
  0xac   :  { %v52_v17 = vmul.f32 0.5, %v51_v16 }
  0xae   :  { %54 = vst.msk [vmem:[%s120_s3] sm:$0xf] %vm53_vm0, %v52_v17 }

</bundles_post_ra>
